<compile_context>
chip_gen: v6e
topology: v6e:2x2x1
jax: 0.10.0
libtpu: 0.0.40
codegen_flags: <defaults>
</compile_context>

<pallas_src>
import math

import jax
import jax.numpy as jnp
from jax.experimental import pallas as pl
from jax.experimental.pallas import tpu as pltpu

LANE_CANDIDATES = (1024, 512, 256, 128)  # lane-dense slab widths (multiples of 128)
BLOCK_ELEMS = 512 * 1024                 # 2 MiB f32 per input pipeline buffer
MIN_GRID_STEPS = 4                       # lets "parallel" shard across v7x's 2 TCs


def _cast_chain_kernel(x_ref, o_ref):
    # v1/v2/v3: interpolate(scale_factor=1.0) / contiguous() / float() are identities.
    x = x_ref[...]

    # v4/v5: f32 -> f16 -> f32 round trip, emulated as round-to-nearest-even of
    # the low 13 mantissa bits.  Exact over the fp16 normal range (covers
    # randn-scale inputs); fp16 subnormal / overflow corners still land on the
    # correct side of the |.| >= 1.0 threshold below.
    bits = pltpu.bitcast(x, jnp.uint32)
    lsb = (bits >> 13) & jnp.uint32(1)
    rounded = bits + jnp.uint32(0x00000FFF) + lsb

    # v6: f64 cast is lossless from f32 (no f64 on TPU) -> no-op.
    # v7..v10: int8/16/32/64 truncate toward zero; v11: bool.
    #   trunc(v5) != 0  <=>  |v5| >= 1.0  <=>  (rounded & 0x7FFFE000) >= 0x3F800000
    # (low-13-bit clear and sign clear folded into one mask; threshold has zero
    # low mantissa bits, so the comparison is unchanged).
    ge_one = (rounded & jnp.uint32(0x7FFFE000)) >= jnp.uint32(0x3F800000)

    # v12/v13: complex64/complex128 of a bool -> (1+0j)/(0+0j); only the real
    # part survives.  v14..v16 (qint8/quint8/qint32) are dead code.
    # v17: bfloat16 of the real part of v13.
    o_ref[...] = jnp.where(ge_one, 1.0, 0.0).astype(jnp.bfloat16)


def _round_up(x, m):
    return (x + m - 1) // m * m


def model_forward(x1):
    """x1: (N, C, H, W) float32 -> (N, C, H, W) bfloat16."""
    orig_shape = x1.shape
    total = math.prod(orig_shape)
    flat = x1.reshape(total).astype(jnp.float32)

    # Pick the widest lane-dense slab width that divides the element count so
    # no wrapper-side pad/slice (extra HBM copies) is needed on the common path.
    lanes = next((l for l in LANE_CANDIDATES if total % l == 0), None)
    if lanes is None:
        # TODO(synk): rare ragged-tail fallback pays one full-array pad copy.
        lanes = 128
        rows = pl.cdiv(total, lanes)
        padded = rows * lanes
        flat = jnp.pad(flat, (0, padded - total))
    else:
        rows = total // lanes
        padded = total

    x2d = flat.reshape(rows, lanes)

    # Block rows: multiple of 16 (bf16 packed sublane tile -> unmasked stores
    # except on the single ragged tail block), capped at ~2 MiB f32, and small
    # enough to give >= MIN_GRID_STEPS steps for dual-TC sharding on v7x.
    max_block_rows = max(16, (BLOCK_ELEMS // lanes) // 16 * 16)
    if rows <= 16:
        block_rows = rows  # full second-last dim: always a legal block shape
    else:
        block_rows = min(max_block_rows, _round_up(pl.cdiv(rows, MIN_GRID_STEPS), 16))
        block_rows = max(16, min(block_rows, rows // 16 * 16))
    grid = pl.cdiv(rows, block_rows)

    y2d = pl.pallas_call(
        _cast_chain_kernel,
        out_shape=jax.ShapeDtypeStruct((rows, lanes), jnp.bfloat16),
        grid=(grid,),
        in_specs=[pl.BlockSpec((block_rows, lanes), lambda i: (i, 0))],
        out_specs=pl.BlockSpec((block_rows, lanes), lambda i: (i, 0)),
        compiler_params=pltpu.CompilerParams(
            # Shards grid steps across both TensorCores on v7x; no-op on
            # single-TC v5e/v6e.
            dimension_semantics=("parallel",),
            # ~6 MiB double-buffered footprint; explicit limit keeps it safe
            # above v5e's 16 MiB scoped default and within v7x's 64 MiB VMEM.
            vmem_limit_bytes=32 * 1024 * 1024,
        ),
    )(x2d)

    if padded != total:
        return y2d.reshape(padded)[:total].reshape(orig_shape)
    return y2d.reshape(orig_shape)


def init_params(key):
    # Mirrors torch.nn.ConvTranspose2d(3, 32, 3, padding=1, stride=1).
    # NOTE: never used in forward() -- created only to reproduce __init__.
    k_w, k_b = jax.random.split(key)
    weight = jax.random.normal(k_w, (3, 32, 3, 3), jnp.float32) * 0.1
    bias = jax.random.normal(k_b, (32,), jnp.float32) * 0.1
    return {"conv_transpose_weight": weight, "conv_transpose_bias": bias}


def _reference(x):
    # Pure-JAX reference of the same cast chain.
    return jnp.where(
        x.astype(jnp.float16).astype(jnp.float32).astype(jnp.int32) != 0, 1.0, 0.0
    ).astype(jnp.bfloat16)


if __name__ == "__main__":
    key = jax.random.PRNGKey(0)
    k_param, k_x1, k_x2, k_x3 = jax.random.split(key, 4)

    params = init_params(k_param)  # unused in forward, as in the PyTorch module

    # Small shape consistent with the module's NCHW input (single-block path).
    x_small = jax.random.normal(k_x1, (2, 3, 32, 32), jnp.float32)
    y_small = jax.block_until_ready(model_forward(x_small))
    assert y_small.shape == x_small.shape and y_small.dtype == jnp.bfloat16
    assert bool(jnp.all(y_small == _reference(x_small)))

    # Module's native shape: multi-block ragged grid (grid=4, partial tail block).
    x_native = jax.random.normal(k_x2, (1, 3, 224, 224), jnp.float32)
    y_native = jax.block_until_ready(model_forward(x_native))
    assert y_native.shape == x_native.shape and y_native.dtype == jnp.bfloat16
    assert bool(jnp.all(y_native == _reference(x_native)))

    # Odd element count: exercises the rare ragged-tail pad fallback.
    x_ragged = jax.random.normal(k_x3, (1, 3, 5, 7), jnp.float32)
    y_ragged = jax.block_until_ready(model_forward(x_ragged))
    assert y_ragged.shape == x_ragged.shape and y_ragged.dtype == jnp.bfloat16
    assert bool(jnp.all(y_ragged == _reference(x_ragged)))

    print("KERNEL_OK")
</pallas_src>

<mosaic_0001>
module attributes {stable_mosaic.version = 11 : i64} {
  func.func @_cast_chain_kernel(%arg0: i32, %arg1: memref<6x1024xf32, #tpu.memory_space<vmem>>, %arg2: memref<6x1024xbf16, #tpu.memory_space<vmem>>) attributes {dimension_semantics = [#tpu.dimension_semantics<parallel>], iteration_bounds = array<i64: 1>, scalar_prefetch = 0 : i64, scratch_operands = 0 : i64, tpu.core_type = #tpu.core_type<tc>, window_params = [{transform_indices = @transform_0, window_bounds = array<i64: 6, 1024>}, {transform_indices = @transform_1, window_bounds = array<i64: 6, 1024>}]} {
    %c0 = arith.constant 0 : index
    %c0_0 = arith.constant 0 : index
    %0 = vector.load %arg1[%c0, %c0_0] : memref<6x1024xf32, #tpu.memory_space<vmem>>, vector<6x1024xf32>
    %1 = tpu.bitcast %0 : vector<6x1024xf32> -> vector<6x1024xi32>
    %c13_i32 = arith.constant 13 : i32
    %2 = vector.broadcast %c13_i32 : i32 to vector<6x1024xi32>
    %3 = arith.shrui %1, %2 : vector<6x1024xi32>
    %c1_i32 = arith.constant 1 : i32
    %4 = vector.broadcast %c1_i32 : i32 to vector<6x1024xi32>
    %5 = arith.andi %3, %4 : vector<6x1024xi32>
    %c4095_i32 = arith.constant 4095 : i32
    %6 = vector.broadcast %c4095_i32 : i32 to vector<6x1024xi32>
    %7 = arith.addi %1, %6 : vector<6x1024xi32>
    %8 = arith.addi %7, %5 : vector<6x1024xi32>
    %c2147475456_i32 = arith.constant 2147475456 : i32
    %9 = vector.broadcast %c2147475456_i32 : i32 to vector<6x1024xi32>
    %10 = arith.andi %8, %9 : vector<6x1024xi32>
    %c1065353216_i32 = arith.constant 1065353216 : i32
    %11 = vector.broadcast %c1065353216_i32 : i32 to vector<6x1024xi32>
    %12 = arith.cmpi uge, %10, %11 : vector<6x1024xi32>
    %cst = arith.constant 1.000000e+00 : f32
    %cst_1 = arith.constant 0.000000e+00 : f32
    %13 = vector.broadcast %cst : f32 to vector<6x1024xf32>
    %14 = vector.broadcast %cst_1 : f32 to vector<6x1024xf32>
    %15 = arith.select %12, %13, %14 : vector<6x1024xi1>, vector<6x1024xf32>
    %16 = arith.truncf %15 : vector<6x1024xf32> to vector<6x1024xbf16>
    %c0_2 = arith.constant 0 : index
    %c0_3 = arith.constant 0 : index
    %17 = vector.load %arg2[%c0_2, %c0_3] : memref<6x1024xbf16, #tpu.memory_space<vmem>>, vector<6x1024xbf16>
    tpu.vector_store %arg2[%c0_2, %c0_3], %16 {strides = array<i32>} : memref<6x1024xbf16, #tpu.memory_space<vmem>>, vector<6x1024xbf16>,
    return
  }
  func.func @transform_0(%arg0: i32) -> (i32, i32) {
    %c0_i32 = arith.constant 0 : i32
    %c0_i32_0 = arith.constant 0 : i32
    return %arg0, %c0_i32 : i32, i32
  }
  func.func @transform_1(%arg0: i32) -> (i32, i32) {
    %c0_i32 = arith.constant 0 : i32
    %c0_i32_0 = arith.constant 0 : i32
    return %arg0, %c0_i32 : i32, i32
  }
}

</mosaic_0001>

<bundles_post_ra>
// kernel: tpu_custom_call.1
= control target key start
LH: loop header
LB: loop body
LE: loop exit
PB: predicated region body
PF: predicated region fallthrough
CT: control target
= control target key end

     0   :  { %6 = vsyncpa [#allocation3], 0  ;;  %s218_s0 = inlined_call_operand.hbm [shape: f32[6,1024], index: 0, kind: input, shape index: {}]   ;;  %s219_s1 = inlined_call_operand.hbm [shape: bf16[6,1024], index: 1, kind: output, shape index: {}]  }
   0x1   :  { %7 = vsyncpa [#allocation4], 0  ;;  %s199_s6 = smov [#allocation2]  }
   0x2   :  { %s14_s7 = sshll.u32 %s199_s6, 4  ;;  %s15_s7 = int_to_ptr.vmem [resolvable:$true] %s14_s7 }
   0x3   :  { %s163_s8 = scalar_lea.vmem %s15_s7, 1024  ;;  %p168_p1 = scmp.lt.s32.totalorder %s15_s7, %s15_s7 }
   0x4   :  { %p164_p0 = scmp.ne.s32.totalorder %s15_s7, %s163_s8  ;;  %p169_p2 = scmp.lt.s32.totalorder %s163_s8, %s163_s8 }
   0x6   :  { %p170_p3 = por %p169_p2, %p168_p1 }
   0x8   :  { %p171_p4 = pnand %p170_p3, %p164_p0 }
   0xa   :  { %174 = shalt.err (!%p171_p4)
}
   0xb   :  { %17 = dma.hbm_to_vmem [thread:$0]  %s218_s0, 1024, %s15_s7, [#allocation3]  }
   0xc   :  { %195 = dma.done.wait [#allocation3], 1024  }
   0xd   :  { %196 = vsyncadd [#allocation3], 4294966272  ;;  %v21_v0 = vld [vmem:[#allocation2] sm:$0x3f]  ;;  %v22_v1 = vld [vmem:[#allocation2 + $0x8] sm:$0x3f] }
   0xe   :  { %v23_v2 = vld [vmem:[#allocation2 + $0x10] sm:$0x3f]  ;;  %v37_v3 = vshrl.u32 %v21_v0, 13  ;;  %v38_v4 = vshrl.u32 %v22_v1, 13  ;;  %v53_v5 = vadd.s32 4095, %v21_v0  ;;  %v54_v6 = vadd.s32 4095, %v22_v1 }
   0xf   :  { %v24_v7 = vld [vmem:[#allocation2 + $0x18] sm:$0x3f]  ;;  %v39_v8 = vshrl.u32 %v23_v2, 13  ;;  %v55_v10 = vadd.s32 4095, %v23_v2  ;;  %v25_v12 = vld [vmem:[#allocation2 + $0x20] sm:$0x3f] }
  0x10   :  { %v40_v9 = vshrl.u32 %v24_v7, 13  ;;  %v56_v11 = vadd.s32 4095, %v24_v7  ;;  %v45_v13 = vand.u32 1, %v37_v3  ;;  %v46_v14 = vand.u32 1, %v38_v4  ;;  %v26_v15 = vld [vmem:[#allocation2 + $0x28] sm:$0x3f] }
  0x11   :  { %v41_v16 = vshrl.u32 %v25_v12, 13  ;;  %v57_v17 = vadd.s32 4095, %v25_v12  ;;  %v47_v18 = vand.u32 1, %v39_v8  ;;  %v42_v20 = vshrl.u32 %v26_v15, 13  ;;  %v27_v22 = vld [vmem:[#allocation2 + $0x30] sm:$0x3f] }
  0x12   :  { %v48_v19 = vand.u32 1, %v40_v9  ;;  %v58_v21 = vadd.s32 4095, %v26_v15  ;;  %v61_v23 = vadd.s32 %v53_v5, %v45_v13  ;;  %v62_v24 = vadd.s32 %v54_v6, %v46_v14  ;;  %v28_v26 = vld [vmem:[#allocation2 + $0x38] sm:$0x3f]  ;;  %s201_s0 = smov [#allocation5]  }
  0x13   :  { %v49_v25 = vand.u32 1, %v41_v16  ;;  %v43_v27 = vshrl.u32 %v27_v22, 13  ;;  %v63_v28 = vadd.s32 %v55_v10, %v47_v18  ;;  %v50_v30 = vand.u32 1, %v42_v20  ;;  %s135_s11 = sshll.u32 %s201_s0, 4  ;;  %s136_s11 = int_to_ptr.vmem [resolvable:$true] %s135_s11 }
  0x14   :  { %v64_v29 = vadd.s32 %v56_v11, %v48_v19  ;;  %v44_v31 = vshrl.u32 %v28_v26, 13  ;;  %v69_v32 = vand.u32 2147475456, %v61_v23  ;;  %v70_v33 = vand.u32 2147475456, %v62_v24  ;;  %s175_s12 = scalar_lea.vmem %s136_s11, 512  ;;  %p180_p6 = scmp.lt.s32.totalorder %s136_s11, %s136_s11 }
  0x15   :  { %v65_v34 = vadd.s32 %v57_v17, %v49_v25  ;;  %v51_v35 = vand.u32 1, %v43_v27  ;;  %v71_v36 = vand.u32 2147475456, %v63_v28  ;;  %v66_v38 = vadd.s32 %v58_v21, %v50_v30  ;;  %p176_p5 = scmp.ne.s32.totalorder %s136_s11, %s175_s12  ;;  %p181_p7 = scmp.lt.s32.totalorder %s175_s12, %s175_s12 }
  0x16   :  { %v72_v37 = vand.u32 2147475456, %v64_v29  ;;  %v52_v39 = vand.u32 1, %v44_v31  ;;  %vm77_vm0 = vcmp.ge.u32.totalorder %v69_v32, 1065353216  ;;  %vm78_vm1 = vcmp.ge.u32.totalorder %v70_v33, 1065353216 }
  0x17   :  { %v73_v40 = vand.u32 2147475456, %v65_v34  ;;  %v59_v41 = vadd.s32 4095, %v27_v22  ;;  %v200_v42 = vmov 0.0   ;;  %vm79_vm2 = vcmp.ge.u32.totalorder %v71_v36, 1065353216  ;;  %p182_p8 = por %p181_p7, %p180_p6 }
  0x18   :  { %v85_v43 = vsel %vm77_vm0, 1.0, %v200_v42  ;;  %v86_v44 = vsel %vm78_vm1, 1.0, %v200_v42  ;;  %vm80_vm3 = vcmp.ge.u32.totalorder %v72_v37, 1065353216  ;;  %v87_v46 = vsel %vm79_vm2, 1.0, %v200_v42 }
  0x19   :  { %v148_v45 = vpack.c.bf16 %v86_v44, %v85_v43  ;;  %v88_v47 = vsel %vm80_vm3, 1.0, %v200_v42  ;;  %v74_v48 = vand.u32 2147475456, %v66_v38  ;;  %vm81_vm4 = vcmp.ge.u32.totalorder %v73_v40, 1065353216  ;;  %p183_p9 = pnand %p182_p8, %p176_p5 }
  0x1a   :  { %v149_v49 = vpack.c.bf16 %v88_v47, %v87_v46  ;;  %v60_v50 = vadd.s32 4095, %v28_v26  ;;  %v67_v51 = vadd.s32 %v59_v41, %v51_v35  ;;  %v89_v52 = vsel %vm81_vm4, 1.0, %v200_v42 }
  0x1b   :  { %125 = vst [vmem:[#allocation5] sm:$0x77] %v148_v45  ;;  %vm82_vm5 = vcmp.ge.u32.totalorder %v74_v48, 1065353216 }
  0x1c   :  { %126 = vst [vmem:[#allocation5 + $0x8] sm:$0x77] %v149_v49  ;;  %v90_v53 = vsel %vm82_vm5, 1.0, %v200_v42  ;;  %v68_v54 = vadd.s32 %v60_v50, %v52_v39  ;;  %v75_v55 = vand.u32 2147475456, %v67_v51 }
  0x1d   :  { %v150_v56 = vpack.c.bf16 %v90_v53, %v89_v52 }
  0x1e   :  { %v76_v57 = vand.u32 2147475456, %v68_v54  ;;  %vm83_vm6 = vcmp.ge.u32.totalorder %v75_v55, 1065353216 }
  0x1f   :  { %127 = vst [vmem:[#allocation5 + $0x10] sm:$0x77] %v150_v56  ;;  %v91_v58 = vsel %vm83_vm6, 1.0, %v200_v42 }
  0x20   :  { %vm84_vm7 = vcmp.ge.u32.totalorder %v76_v57, 1065353216 }
  0x21   :  { %v92_v59 = vsel %vm84_vm7, 1.0, %v200_v42 }
  0x22   :  { %v151_v60 = vpack.c.bf16 %v92_v59, %v91_v58 }
  0x24   :  { %128 = vst [vmem:[#allocation5 + $0x18] sm:$0x77] %v151_v60 }
  0x25   :  { %186 = shalt.err (!%p183_p9)
}
  0x26   :  { %138 = dma.vmem_to_hbm [thread:$0]  %s136_s11, 512, %s219_s1, [#allocation4]  }
  0x27   :  { %197 = dma.done.wait [#allocation4], 512  }
  0x28   :  { %198 = vsyncadd [#allocation4], 4294966784 }
  0x29   :  { %142 = vsyncpa [#allocation3], 1 }
  0x2a   :  { %143 = vsyncpa [#allocation4], 1 }

</bundles_post_ra>
